<compile_context>
chip_gen: v7x
topology: tpu7x:2x2x1
jax: 0.10.0
libtpu: 0.0.40
codegen_flags: <defaults>
</compile_context>

<pallas_src>
import functools
import math

import jax
import jax.numpy as jnp
from jax.experimental import pallas as pl
from jax.experimental.pallas import tpu as pltpu

_F32 = jnp.float32
_BF16 = jnp.bfloat16


# ----------------------------- in-kernel helpers -----------------------------

def _layer_norm(x, gamma, beta, eps=1e-12):
    # Single-pass LN: var = E[x^2] - E[x]^2 (halves the cross-lane reductions).
    mean = jnp.mean(x, axis=-1, keepdims=True)
    mean_sq = jnp.mean(x * x, axis=-1, keepdims=True)
    var = jnp.maximum(mean_sq - mean * mean, 0.0)
    return (x - mean) * jax.lax.rsqrt(var + eps) * gamma + beta


def _gelu_tanh(x):
    c = math.sqrt(2.0 / math.pi)
    return 0.5 * x * (1.0 + jnp.tanh(c * (x + 0.044715 * x * x * x)))


def _supports_bf16_eup():
    """bf16 exp on the EUP exists on v6e / v7x; fall back to f32 elsewhere."""
    try:
        kind = jax.devices()[0].device_kind.lower()
    except Exception:
        return False
    return any(tag in kind for tag in ("v6", "v7", "7x"))


# -------------------- kernel 1: K/V projection (both branches) ----------------

def _kv_proj_kernel(h_ref, w_ref, b_ref, km_ref, vm_ref, ka_ref, va_ref):
    # h_ref: (1, TS, H) bf16; w_ref: (H, 2*(A_m+A_a)) bf16 = [Km | Vm | Ka | Va]
    h = h_ref[0]                                                   # (TS, H)
    kv = (jnp.dot(h, w_ref[...], preferred_element_type=_F32)
          + b_ref[...]).astype(_BF16)                              # (TS, 2*A_tot)
    ts = h.shape[0]
    _, nh_m, _, dh_m = km_ref.shape
    _, nh_a, _, dh_a = ka_ref.shape
    a_m, a_a = nh_m * dh_m, nh_a * dh_a

    def heads(x, nh, dh):                  # (TS, nh*dh) -> (nh, TS, dh)
        return jnp.transpose(x.reshape(ts, nh, dh), (1, 0, 2))

    km_ref[0] = heads(kv[:, :a_m], nh_m, dh_m)
    vm_ref[0] = heads(kv[:, a_m:2 * a_m], nh_m, dh_m)
    ka_ref[0] = heads(kv[:, 2 * a_m:2 * a_m + a_a], nh_a, dh_a)
    va_ref[0] = heads(kv[:, 2 * a_m + a_a:], nh_a, dh_a)


# ------------------ kernel 2: fused attention + FFN + gate --------------------

def _exbert_kernel(
        # streamed activations
        hq_ref, mask_ref, km_ref, vm_ref, ka_ref, va_ref,
        # Q projection (both branches concatenated, 1/sqrt(dh) folded in)
        wq_ref, bq_ref,
        # main branch tail
        wao_m, bao_m, ln1g_m, ln1b_m, wi_m, bi_m, wo_m, bo_m, ln2g_m, ln2b_m,
        # ADD branch tail
        wao_a, bao_a, ln1g_a, ln1b_a, wi_a, bi_a, wo_a, bo_a, ln2g_a, ln2b_a,
        # gate
        wg_ref, bg_ref,
        # output
        out_ref,
        # scratch: cached Q + flash running state per branch
        qm_scr, qa_scr, m_m, l_m, acc_m, m_a, l_a, acc_a,
        *, exp_dtype):
    ki = pl.program_id(2)
    nk = pl.num_programs(2)

    hq = hq_ref[0]                       # (TQ, H) bf16 -- same block across kv
    mask = mask_ref[0]                   # (1, TK) f32 additive key mask

    nh_m_, tq_, dh_m_ = qm_scr.shape
    nh_a_, _, dh_a_ = qa_scr.shape
    a_m = nh_m_ * dh_m_

    @pl.when(ki == 0)
    def _init():
        # Q projection ONCE per q tile: one wide (TQ,H)@(H, A_m+A_a) MXU matmul
        # for BOTH branches, then cached per-head in VMEM for all kv steps.
        q_all = (jnp.dot(hq, wq_ref[...], preferred_element_type=_F32)
                 + bq_ref[...]).astype(_BF16)                      # (TQ, A_m+A_a)
        qm_scr[...] = jnp.transpose(
            q_all[:, :a_m].reshape(tq_, nh_m_, dh_m_), (1, 0, 2))
        qa_scr[...] = jnp.transpose(
            q_all[:, a_m:].reshape(tq_, nh_a_, dh_a_), (1, 0, 2))
        for m_sc, l_sc, acc_sc in ((m_m, l_m, acc_m), (m_a, l_a, acc_a)):
            m_sc[...] = jnp.full(m_sc.shape, -jnp.inf, m_sc.dtype)
            l_sc[...] = jnp.zeros(l_sc.shape, l_sc.dtype)
            acc_sc[...] = jnp.zeros(acc_sc.shape, acc_sc.dtype)

    def flash_step(q_scr, k_ref, v_ref, m_sc, l_sc, acc_sc):
        q_h = q_scr[...]                 # (nh, TQ, dh) bf16, cached at ki == 0
        k_h = k_ref[0]                   # (nh, TK, dh) bf16, head-major from HBM
        v_h = v_ref[0]                   # (nh, TK, dh) bf16
        s = jnp.einsum('hqd,hkd->hqk', q_h, k_h,
                       preferred_element_type=_F32) + mask          # (nh,TQ,TK)
        m_new = jnp.maximum(m_sc[...], jnp.max(s, axis=-1, keepdims=True))
        alpha = jnp.exp(m_sc[...] - m_new)
        # exp in bf16 on v6e/v7x (bf16 EUP), f32 elsewhere; f32 row-sum for l.
        p = jnp.exp((s - m_new).astype(exp_dtype))
        l_sc[...] = alpha * l_sc[...] + jnp.sum(p, axis=-1, keepdims=True,
                                                dtype=_F32)
        acc_sc[...] = alpha * acc_sc[...] + jnp.einsum(
            'hqk,hkd->hqd', p.astype(_BF16), v_h,
            preferred_element_type=_F32)
        m_sc[...] = m_new

    flash_step(qm_scr, km_ref, vm_ref, m_m, l_m, acc_m)
    flash_step(qa_scr, ka_ref, va_ref, m_a, l_a, acc_a)

    @pl.when(ki == nk - 1)
    def _finalize():
        hq_f = hq.astype(_F32)

        def branch_tail(l_sc, acc_sc, wao, bao, ln1g, ln1b,
                        wi, bi, wo, bo, ln2g, ln2b):
            nh, tq, dh = acc_sc.shape
            inv_l = pl.reciprocal(l_sc[...], approx=True)            # EUP slot
            ctx = acc_sc[...] * inv_l                                # (nh,TQ,dh)
            # One relayout per q tile, then a single wide (TQ,nh*dh)@(nh*dh,H)
            # matmul: the head reduction happens inside the MXU.
            ctx2 = jnp.transpose(ctx, (1, 0, 2)).reshape(tq, nh * dh).astype(_BF16)
            attn = jnp.dot(ctx2, wao[...], preferred_element_type=_F32) + bao[...]
            attn = _layer_norm(attn + hq_f, ln1g[...], ln1b[...])
            inter = jnp.dot(attn.astype(_BF16), wi[...],
                            preferred_element_type=_F32) + bi[...]
            inter = _gelu_tanh(inter)
            out = jnp.dot(inter.astype(_BF16), wo[...],
                          preferred_element_type=_F32) + bo[...]
            return _layer_norm(out + attn, ln2g[...], ln2b[...])

        out_main = branch_tail(l_m, acc_m, wao_m, bao_m, ln1g_m, ln1b_m,
                               wi_m, bi_m, wo_m, bo_m, ln2g_m, ln2b_m)
        out_add = branch_tail(l_a, acc_a, wao_a, bao_a, ln1g_a, ln1b_a,
                              wi_a, bi_a, wo_a, bo_a, ln2g_a, ln2b_a)

        logits = jnp.sum(hq_f * wg_ref[...], axis=-1, keepdims=True) + bg_ref[...]
        gate = 1.0 / (1.0 + jnp.exp(-logits))                        # (TQ, 1)
        out_ref[0] = (gate * out_main
                      + (1.0 - gate) * out_add).astype(out_ref.dtype)


# ---------------------------- wrapper / packing -------------------------------

def _const_spec(shape, grid_rank):
    """VMEM-resident, SINGLE-buffered weight block (constant index map)."""
    zero = (0,) * len(shape)
    if grid_rank == 2:
        return pl.BlockSpec(shape, lambda b, si: zero,
                            pipeline_mode=pl.Buffered(1))
    return pl.BlockSpec(shape, lambda b, qi, ki: zero,
                        pipeline_mode=pl.Buffered(1))


def exbert_layer(h, attention_mask, params_main, params_add, wg, bg,
                 num_heads_main, num_heads_add, *,
                 block_q=256, block_k=256, block_kv=256,
                 out_dtype=jnp.bfloat16, exp_dtype=None,
                 # v7x-safe default; raise toward 96-128 MiB on v5e/v6e along
                 # with larger block_q/block_k for long sequences.
                 vmem_limit_bytes=48 * 1024 * 1024):
    """Fused exBertLayer forward.  h:(B,S,H), attention_mask:(B,S) additive."""
    B, S, H = h.shape
    tq, tk, ts = min(block_q, S), min(block_k, S), min(block_kv, S)
    assert S % tq == 0 and S % tk == 0 and S % ts == 0, \
        "seq len must divide the tile sizes"
    nq, nk, ns = S // tq, S // tk, S // ts

    A_m = params_main['wq'].shape[1]
    A_a = params_add['wq'].shape[1]
    dh_m = A_m // num_heads_main
    dh_a = A_a // num_heads_add
    assert dh_m * num_heads_main == A_m and dh_a * num_heads_add == A_a

    if exp_dtype is None:
        exp_dtype = _BF16 if _supports_bf16_eup() else _F32

    h_bf = h.astype(_BF16)
    cparams = pltpu.CompilerParams(
        dimension_semantics=("parallel", "parallel"),
        vmem_limit_bytes=vmem_limit_bytes)

    # ---- kernel 1: K/V for both branches, one wide matmul, head-major output.
    w_kv = jnp.concatenate([params_main['wk'], params_main['wv'],
                            params_add['wk'], params_add['wv']],
                           axis=1).astype(_BF16)                     # (H, 2*(A_m+A_a))
    b_kv = jnp.concatenate([params_main['bk'], params_main['bv'],
                            params_add['bk'], params_add['bv']],
                           axis=1).astype(_F32)

    kv_out_shapes = (
        jax.ShapeDtypeStruct((B, num_heads_main, S, dh_m), _BF16),   # K main
        jax.ShapeDtypeStruct((B, num_heads_main, S, dh_m), _BF16),   # V main
        jax.ShapeDtypeStruct((B, num_heads_add, S, dh_a), _BF16),    # K add
        jax.ShapeDtypeStruct((B, num_heads_add, S, dh_a), _BF16),    # V add
    )
    kv_out_specs = [
        pl.BlockSpec((1, num_heads_main, ts, dh_m), lambda b, si: (b, 0, si, 0)),
        pl.BlockSpec((1, num_heads_main, ts, dh_m), lambda b, si: (b, 0, si, 0)),
        pl.BlockSpec((1, num_heads_add, ts, dh_a), lambda b, si: (b, 0, si, 0)),
        pl.BlockSpec((1, num_heads_add, ts, dh_a), lambda b, si: (b, 0, si, 0)),
    ]
    k_m, v_m, k_a, v_a = pl.pallas_call(
        _kv_proj_kernel,
        out_shape=kv_out_shapes,
        grid_spec=pltpu.PrefetchScalarGridSpec(
            num_scalar_prefetch=0,
            grid=(B, ns),
            in_specs=[
                pl.BlockSpec((1, ts, H), lambda b, si: (b, si, 0)),
                _const_spec(w_kv.shape, 2),
                _const_spec(b_kv.shape, 2),
            ],
            out_specs=kv_out_specs),
        compiler_params=cparams,
    )(h_bf, w_kv, b_kv)

    # ---- kernel 2: fused flash attention + FFN + gate for both branches.
    scale_m = 1.0 / math.sqrt(dh_m)
    scale_a = 1.0 / math.sqrt(dh_a)
    wq_cat = jnp.concatenate([params_main['wq'] * scale_m,
                              params_add['wq'] * scale_a], axis=1).astype(_BF16)
    bq_cat = jnp.concatenate([params_main['bq'] * scale_m,
                              params_add['bq'] * scale_a], axis=1).astype(_F32)

    def tail(p):
        return [p['wao'].astype(_BF16), p['bao'].astype(_F32),
                p['ln1_g'].astype(_F32), p['ln1_b'].astype(_F32),
                p['wi'].astype(_BF16), p['bi'].astype(_F32),
                p['wo'].astype(_BF16), p['bo'].astype(_F32),
                p['ln2_g'].astype(_F32), p['ln2_b'].astype(_F32)]

    weight_args = ([wq_cat, bq_cat] + tail(params_main) + tail(params_add)
                   + [wg.astype(_F32), bg.astype(_F32)])

    mask3 = attention_mask.reshape(B, 1, S).astype(_F32)

    in_specs = [
        pl.BlockSpec((1, tq, H), lambda b, qi, ki: (b, qi, 0)),              # h (q tile)
        pl.BlockSpec((1, 1, tk), lambda b, qi, ki: (b, 0, ki)),              # mask
        pl.BlockSpec((1, num_heads_main, tk, dh_m),
                     lambda b, qi, ki: (b, 0, ki, 0)),                       # K main
        pl.BlockSpec((1, num_heads_main, tk, dh_m),
                     lambda b, qi, ki: (b, 0, ki, 0)),                       # V main
        pl.BlockSpec((1, num_heads_add, tk, dh_a),
                     lambda b, qi, ki: (b, 0, ki, 0)),                       # K add
        pl.BlockSpec((1, num_heads_add, tk, dh_a),
                     lambda b, qi, ki: (b, 0, ki, 0)),                       # V add
    ] + [_const_spec(w.shape, 3) for w in weight_args]

    scratch_shapes = [
        pltpu.VMEM((num_heads_main, tq, dh_m), _BF16),   # cached Q main
        pltpu.VMEM((num_heads_add, tq, dh_a), _BF16),    # cached Q add
        pltpu.VMEM((num_heads_main, tq, 1), _F32),       # m main
        pltpu.VMEM((num_heads_main, tq, 1), _F32),       # l main
        pltpu.VMEM((num_heads_main, tq, dh_m), _F32),    # acc main
        pltpu.VMEM((num_heads_add, tq, 1), _F32),        # m add
        pltpu.VMEM((num_heads_add, tq, 1), _F32),        # l add
        pltpu.VMEM((num_heads_add, tq, dh_a), _F32),     # acc add
    ]

    return pl.pallas_call(
        functools.partial(_exbert_kernel, exp_dtype=exp_dtype),
        out_shape=jax.ShapeDtypeStruct((B, S, H), out_dtype),
        grid_spec=pltpu.PrefetchScalarGridSpec(
            num_scalar_prefetch=0,
            grid=(B, nq, nk),
            in_specs=in_specs,
            out_specs=pl.BlockSpec((1, tq, H), lambda b, qi, ki: (b, qi, 0)),
            scratch_shapes=scratch_shapes),
        compiler_params=pltpu.CompilerParams(
            dimension_semantics=("parallel", "parallel", "arbitrary"),
            vmem_limit_bytes=vmem_limit_bytes),
    )(h_bf, mask3, k_m, v_m, k_a, v_a, *weight_args)


# ------------------------------- parameter init -------------------------------

def _init_linear(key, fan_in, fan_out):
    kw, kb = jax.random.split(key)
    w = jax.random.normal(kw, (fan_in, fan_out), jnp.float32) * 0.02
    b = jax.random.normal(kb, (1, fan_out), jnp.float32) * 0.02
    return w, b


def init_branch_params(key, hidden, all_head, intermediate):
    ks = jax.random.split(key, 6)
    wq, bq = _init_linear(ks[0], hidden, all_head)
    wk, bk = _init_linear(ks[1], hidden, all_head)
    wv, bv = _init_linear(ks[2], hidden, all_head)
    wao, bao = _init_linear(ks[3], all_head, hidden)
    wi, bi = _init_linear(ks[4], hidden, intermediate)
    wo, bo = _init_linear(ks[5], intermediate, hidden)
    return dict(
        wq=wq, bq=bq, wk=wk, bk=bk, wv=wv, bv=bv,
        wao=wao, bao=bao,
        ln1_g=jnp.ones((1, hidden), jnp.float32),
        ln1_b=jnp.zeros((1, hidden), jnp.float32),
        wi=wi, bi=bi, wo=wo, bo=bo,
        ln2_g=jnp.ones((1, hidden), jnp.float32),
        ln2_b=jnp.zeros((1, hidden), jnp.float32),
    )


if __name__ == "__main__":
    # config:      hidden=32, heads=4, intermediate=64
    # config_ADD:  hidden=16, heads=2, intermediate=32
    B, S = 2, 8
    H, NH, I = 32, 4, 64
    H_ADD, NH_ADD, I_ADD = 16, 2, 32

    key = jax.random.PRNGKey(0)
    k_h, k_main, k_add, k_gate = jax.random.split(key, 4)

    hidden_states = jax.random.normal(k_h, (B, S, H), jnp.float32)

    # BERT-style additive mask: 0 for attended positions, -1e4 for masked.
    keep = jnp.ones((B, S), jnp.float32).at[1, S - 2:].set(0.0)
    attention_mask = (1.0 - keep) * -10000.0                        # (B, S)

    params_main = init_branch_params(k_main, H, H, I)        # exBertAttention(config, config)
    params_add = init_branch_params(k_add, H, H_ADD, I_ADD)  # exBertAttention(config, config_ADD)
    wg, bg = _init_linear(k_gate, H, 1)
    wg = wg.T                                                 # (1, H)

    out = exbert_layer(hidden_states, attention_mask, params_main, params_add,
                       wg, bg, NH, NH_ADD)
    out = jax.block_until_ready(out)
    assert out.shape == (B, S, H)
    assert bool(jnp.all(jnp.isfinite(out.astype(jnp.float32))))
    print("KERNEL_OK")
</pallas_src>

<mosaic_0001>
module attributes {stable_mosaic.version = 11 : i64} {
  func.func @_kv_proj_kernel(%arg0: i32, %arg1: i32, %arg2: memref<1x8x32xbf16, #tpu.memory_space<vmem>>, %arg3: memref<32x96xbf16, #tpu.memory_space<vmem>>, %arg4: memref<1x96xf32, #tpu.memory_space<vmem>>, %arg5: memref<1x4x8x8xbf16, #tpu.memory_space<vmem>>, %arg6: memref<1x4x8x8xbf16, #tpu.memory_space<vmem>>, %arg7: memref<1x2x8x8xbf16, #tpu.memory_space<vmem>>, %arg8: memref<1x2x8x8xbf16, #tpu.memory_space<vmem>>) attributes {dimension_semantics = [#tpu.dimension_semantics<parallel>, #tpu.dimension_semantics<parallel>], iteration_bounds = array<i64: 2, 1>, scalar_prefetch = 0 : i64, scratch_operands = 0 : i64, tpu.core_type = #tpu.core_type<tc>, window_params = [{transform_indices = @transform_0, window_bounds = array<i64: 1, 8, 32>}, {pipeline_mode = #tpu.pipeline_mode<synchronous>, transform_indices = @transform_1, window_bounds = array<i64: 32, 96>}, {pipeline_mode = #tpu.pipeline_mode<synchronous>, transform_indices = @transform_2, window_bounds = array<i64: 1, 96>}, {transform_indices = @transform_3, window_bounds = array<i64: 1, 4, 8, 8>}, {transform_indices = @transform_4, window_bounds = array<i64: 1, 4, 8, 8>}, {transform_indices = @transform_5, window_bounds = array<i64: 1, 2, 8, 8>}, {transform_indices = @transform_6, window_bounds = array<i64: 1, 2, 8, 8>}]} {
    %c0 = arith.constant 0 : index
    %c0_0 = arith.constant 0 : index
    %c0_1 = arith.constant 0 : index
    %0 = vector.load %arg2[%c0, %c0_0, %c0_1] : memref<1x8x32xbf16, #tpu.memory_space<vmem>>, vector<1x8x32xbf16>
    %1 = vector.shape_cast %0 : vector<1x8x32xbf16> to vector<8x32xbf16>
    %c0_2 = arith.constant 0 : index
    %c0_3 = arith.constant 0 : index
    %2 = vector.load %arg3[%c0_2, %c0_3] : memref<32x96xbf16, #tpu.memory_space<vmem>>, vector<32x96xbf16>
    %cst = arith.constant dense<0.000000e+00> : vector<8x96xf32>
    %3 = tpu.matmul %1, %2, %cst {dimension_numbers = #tpu.dot_dimension_numbers<[1], [0], [0], [1], [0, 0, 1, 1], [], []>} : vector<8x32xbf16>, vector<32x96xbf16>, vector<8x96xf32> -> vector<8x96xf32>
    %c0_4 = arith.constant 0 : index
    %c0_5 = arith.constant 0 : index
    %4 = vector.load %arg4[%c0_4, %c0_5] : memref<1x96xf32, #tpu.memory_space<vmem>>, vector<1x96xf32>
    %5 = vector.broadcast %4 : vector<1x96xf32> to vector<8x96xf32>
    %6 = arith.addf %3, %5 : vector<8x96xf32>
    %7 = arith.truncf %6 : vector<8x96xf32> to vector<8x96xbf16>
    %8 = vector.extract_strided_slice %7 {offsets = [0, 0], sizes = [8, 32], strides = [1, 1]} : vector<8x96xbf16> to vector<8x32xbf16>
    %9 = vector.shape_cast %8 : vector<8x32xbf16> to vector<8x4x8xbf16>
    %10 = tpu.transpose %9, [1, 0, 2] : vector<8x4x8xbf16> -> vector<4x8x8xbf16>
    %c0_6 = arith.constant 0 : index
    %c0_7 = arith.constant 0 : index
    %c0_8 = arith.constant 0 : index
    %c0_9 = arith.constant 0 : index
    %11 = vector.load %arg5[%c0_6, %c0_7, %c0_8, %c0_9] : memref<1x4x8x8xbf16, #tpu.memory_space<vmem>>, vector<1x4x8x8xbf16>
    %12 = vector.shape_cast %11 : vector<1x4x8x8xbf16> to vector<4x8x8xbf16>
    %13 = vector.shape_cast %10 : vector<4x8x8xbf16> to vector<1x4x8x8xbf16>
    tpu.vector_store %arg5[%c0_6, %c0_7, %c0_8, %c0_9], %13 {strides = array<i32>} : memref<1x4x8x8xbf16, #tpu.memory_space<vmem>>, vector<1x4x8x8xbf16>,
    %14 = vector.extract_strided_slice %7 {offsets = [0, 32], sizes = [8, 32], strides = [1, 1]} : vector<8x96xbf16> to vector<8x32xbf16>
    %15 = vector.shape_cast %14 : vector<8x32xbf16> to vector<8x4x8xbf16>
    %16 = tpu.transpose %15, [1, 0, 2] : vector<8x4x8xbf16> -> vector<4x8x8xbf16>
    %c0_10 = arith.constant 0 : index
    %c0_11 = arith.constant 0 : index
    %c0_12 = arith.constant 0 : index
    %c0_13 = arith.constant 0 : index
    %17 = vector.load %arg6[%c0_10, %c0_11, %c0_12, %c0_13] : memref<1x4x8x8xbf16, #tpu.memory_space<vmem>>, vector<1x4x8x8xbf16>
    %18 = vector.shape_cast %17 : vector<1x4x8x8xbf16> to vector<4x8x8xbf16>
    %19 = vector.shape_cast %16 : vector<4x8x8xbf16> to vector<1x4x8x8xbf16>
    tpu.vector_store %arg6[%c0_10, %c0_11, %c0_12, %c0_13], %19 {strides = array<i32>} : memref<1x4x8x8xbf16, #tpu.memory_space<vmem>>, vector<1x4x8x8xbf16>,
    %20 = vector.extract_strided_slice %7 {offsets = [0, 64], sizes = [8, 16], strides = [1, 1]} : vector<8x96xbf16> to vector<8x16xbf16>
    %21 = vector.shape_cast %20 : vector<8x16xbf16> to vector<8x2x8xbf16>
    %22 = tpu.transpose %21, [1, 0, 2] : vector<8x2x8xbf16> -> vector<2x8x8xbf16>
    %c0_14 = arith.constant 0 : index
    %c0_15 = arith.constant 0 : index
    %c0_16 = arith.constant 0 : index
    %c0_17 = arith.constant 0 : index
    %23 = vector.load %arg7[%c0_14, %c0_15, %c0_16, %c0_17] : memref<1x2x8x8xbf16, #tpu.memory_space<vmem>>, vector<1x2x8x8xbf16>
    %24 = vector.shape_cast %23 : vector<1x2x8x8xbf16> to vector<2x8x8xbf16>
    %25 = vector.shape_cast %22 : vector<2x8x8xbf16> to vector<1x2x8x8xbf16>
    tpu.vector_store %arg7[%c0_14, %c0_15, %c0_16, %c0_17], %25 {strides = array<i32>} : memref<1x2x8x8xbf16, #tpu.memory_space<vmem>>, vector<1x2x8x8xbf16>,
    %26 = vector.extract_strided_slice %7 {offsets = [0, 80], sizes = [8, 16], strides = [1, 1]} : vector<8x96xbf16> to vector<8x16xbf16>
    %27 = vector.shape_cast %26 : vector<8x16xbf16> to vector<8x2x8xbf16>
    %28 = tpu.transpose %27, [1, 0, 2] : vector<8x2x8xbf16> -> vector<2x8x8xbf16>
    %c0_18 = arith.constant 0 : index
    %c0_19 = arith.constant 0 : index
    %c0_20 = arith.constant 0 : index
    %c0_21 = arith.constant 0 : index
    %29 = vector.load %arg8[%c0_18, %c0_19, %c0_20, %c0_21] : memref<1x2x8x8xbf16, #tpu.memory_space<vmem>>, vector<1x2x8x8xbf16>
    %30 = vector.shape_cast %29 : vector<1x2x8x8xbf16> to vector<2x8x8xbf16>
    %31 = vector.shape_cast %28 : vector<2x8x8xbf16> to vector<1x2x8x8xbf16>
    tpu.vector_store %arg8[%c0_18, %c0_19, %c0_20, %c0_21], %31 {strides = array<i32>} : memref<1x2x8x8xbf16, #tpu.memory_space<vmem>>, vector<1x2x8x8xbf16>,
    return
  }
  func.func @transform_0(%arg0: i32, %arg1: i32) -> (i32, i32, i32) {
    %c0_i32 = arith.constant 0 : i32
    %c0_i32_0 = arith.constant 0 : i32
    return %arg0, %arg1, %c0_i32 : i32, i32, i32
  }
  func.func @transform_1(%arg0: i32, %arg1: i32) -> (i32, i32) {
    %c0_i32 = arith.constant 0 : i32
    %c0_i32_0 = arith.constant 0 : i32
    %c0_i32_1 = arith.constant 0 : i32
    return %c0_i32, %c0_i32_0 : i32, i32
  }
  func.func @transform_2(%arg0: i32, %arg1: i32) -> (i32, i32) {
    %c0_i32 = arith.constant 0 : i32
    %c0_i32_0 = arith.constant 0 : i32
    %c0_i32_1 = arith.constant 0 : i32
    return %c0_i32, %c0_i32_0 : i32, i32
  }
  func.func @transform_3(%arg0: i32, %arg1: i32) -> (i32, i32, i32, i32) {
    %c0_i32 = arith.constant 0 : i32
    %c0_i32_0 = arith.constant 0 : i32
    %c0_i32_1 = arith.constant 0 : i32
    return %arg0, %c0_i32, %arg1, %c0_i32_0 : i32, i32, i32, i32
  }
  func.func @transform_4(%arg0: i32, %arg1: i32) -> (i32, i32, i32, i32) {
    %c0_i32 = arith.constant 0 : i32
    %c0_i32_0 = arith.constant 0 : i32
    %c0_i32_1 = arith.constant 0 : i32
    return %arg0, %c0_i32, %arg1, %c0_i32_0 : i32, i32, i32, i32
  }
  func.func @transform_5(%arg0: i32, %arg1: i32) -> (i32, i32, i32, i32) {
    %c0_i32 = arith.constant 0 : i32
    %c0_i32_0 = arith.constant 0 : i32
    %c0_i32_1 = arith.constant 0 : i32
    return %arg0, %c0_i32, %arg1, %c0_i32_0 : i32, i32, i32, i32
  }
  func.func @transform_6(%arg0: i32, %arg1: i32) -> (i32, i32, i32, i32) {
    %c0_i32 = arith.constant 0 : i32
    %c0_i32_0 = arith.constant 0 : i32
    %c0_i32_1 = arith.constant 0 : i32
    return %arg0, %c0_i32, %arg1, %c0_i32_0 : i32, i32, i32, i32
  }
}

</mosaic_0001>

<bundles_post_ra>
// kernel: tpu_custom_call.1
= control target key start
LH: loop header
LB: loop body
LE: loop exit
PB: predicated region body
PF: predicated region fallthrough
CT: control target
= control target key end

     0   :  { %s2238_s0 = inlined_call_operand.hbm [shape: bf16[2,8,32], index: 0, kind: input, shape index: {}]   ;;  %s2239_s1 = inlined_call_operand.hbm [shape: bf16[32,96], index: 1, kind: input, shape index: {}]   ;;  %s2240_s2 = inlined_call_operand.vmem [shape: f32[1,96], index: 2, kind: input, shape index: {}]   ;;  %s2241_s3 = inlined_call_operand.hbm [shape: bf16[2,4,8,8], index: 3, kind: output, shape index: {0}]   ;;  %s2242_s4 = inlined_call_operand.hbm [shape: bf16[2,4,8,8], index: 4, kind: output, shape index: {1}]   ;;  %s2243_s5 = inlined_call_operand.hbm [shape: bf16[2,2,8,8], index: 5, kind: output, shape index: {2}]   ;;  %s2244_s6 = inlined_call_operand.hbm [shape: bf16[2,2,8,8], index: 6, kind: output, shape index: {3}]  }
   0x1   :  { %2251 = sst [smem:[#allocation18_spill]] %s2239_s1 }
   0x2   :  { %12 = vsyncpa [#allocation3], 0 }
   0x3   :  { %14 = vsyncpa [#allocation3 + $0x1], 0 }
   0x4   :  { %15 = vsyncpa [#allocation6], 0 }
   0x5   :  { %16 = vsyncpa [#allocation4], 0 }
   0x6   :  { %18 = vsyncpa [#allocation4 + $0x1], 0 }
   0x7   :  { %19 = vsyncpa [#allocation9], 0 }
   0x8   :  { %21 = vsyncpa [#allocation9 + $0x1], 0 }
   0x9   :  { %22 = vsyncpa [#allocation12], 0 }
   0xa   :  { %24 = vsyncpa [#allocation12 + $0x1], 0  ;;  %s1764_s21 = smov 0   ;;  %s1766_s22 = smov 0  }
   0xb   :  { %s1768_s23 = smov 0   ;;  %s1770_s24 = smov 0  }
   0xc   :  { %s1772_s25 = smov 0   ;;  %s1774_s26 = smov 0  }
   0xd LB: > { %s1795_s27 = sadd.s32 4294967295, %s1707_s26   ;;  %s2248_s28 = sadd.s32 4294967294, %s1707_s26   ;;  %s1707_s26 = sphi %s1774_s26, %s30_s26   ;;  %s1703_s25 = sphi %s1772_s25, %s2274_s25   ;;  %s1699_s24 = sphi %s1770_s24, %s2273_s24   ;;  %s1695_s23 = sphi %s1768_s23, %s2272_s23   ;;  %s1691_s22 = sphi %s1766_s22, %s2271_s22   ;;  %s1687_s21 = sphi %s1764_s21, %s2270_s21  }
   0xe   : > { %p64_p0 = scmp.ne.s32.totalorder %s1691_s22, %s1687_s21  ;;  %p2245_p1 = scmp.eq.s32.totalorder %s1795_s27, 0 }
   0xf   : > { %p138_p3 = scmp.eq.s32.totalorder %s2248_s28, 1  ;;  %p1322_p5 = scmp.ge.s32.totalorder %s1707_s26, 1 }
  0x10   : > { %p1806_p4 = por %p2245_p1, %p64_p0  ;;  %p229_p7 = scmp.lt.s32.totalorder %s1707_s26, 3 }
  0x11   : > { %p1811_p6 = por %p138_p3, %p64_p0  ;;  %s1709_s8 = smov [#allocation5]  }
  0x12   : > { %s2252_s29 = scalar_select %p1806_p4, 1, 0 }
  0x13   : > { %s2253_s30 = scalar_select %p1811_p6, 1, 0 }
  0x14   : > { %p1816_p8 = pnand %p1322_p5, %p229_p7  ;;  %s241_s9 = sshll.u32 %s1709_s8, 4  ;;  %s242_s9 = int_to_ptr.vmem [resolvable:$true] %s241_s9 }
  0x15   : > { %s42_s11 = sadd.s32 1, %s1703_s25  ;;  %s2256_s1 = sld [smem:[#allocation18_spill]] }
  0x16   : > { %s2254_s7 = scalar_select %p1816_p8, 1, 0 }
  0x17   : > { %p1381_p9 = pneg %p1816_p8 }
  0x19   : > { %p1825_p11 = pnand %p1381_p9, %p2245_p1 }
  0x1b   : > { %s1471_s14 = scalar_lea.hbm %s2256_s1, 256  ;;  %p1473_p13 = pneg %p1825_p11 }
  0x1c   : > { %p1472_p12 = scmp.ne.s32.totalorder %s2256_s1, %s1471_s14  ;;  %p1478_p5 = scmp.lt.u32.totalorder %s1471_s14, %s2256_s1 }
  0x1e   : > { %p1474_p0 = pnand %p1473_p13, %p1472_p12 }
  0x20   : > { %p1475_p3 = pneg %p1474_p0 }
  0x22   : > { %p1480_p7 = pnand %p1478_p5, %p1475_p3 }
  0x24   : > { %1483 = shalt.err (!%p1480_p7)
}
  0x25   : > { %s1484_s19 = scalar_lea.vmem %s242_s9, 256  ;;  %p1492_p2 = scmp.lt.s32.totalorder %s242_s9, %s242_s9 }
  0x26   : > { %p1485_p9 = scmp.ne.s32.totalorder %s242_s9, %s1484_s19  ;;  %p1493_p6 = scmp.lt.s32.totalorder %s1484_s19, %s1484_s19 }
  0x28   : > { %p1487_p10 = pnand %p1485_p9, %p1473_p13  ;;  %p1494_p4 = por %p1493_p6, %p1492_p2 }
  0x2a   : > { %p1488_p1 = pneg %p1487_p10 }
  0x2c   : > { %p1495_p8 = pnand %p1494_p4, %p1488_p1 }
  0x2e   : > { %1498 = shalt.err (!%p1495_p8)
}
  0x2f   : > { %s1710_s20 = smov 64   ;;  %s1711_s8 = smov 4  }
  0x30   : > { %1384 = dma.hbm_to_vmem [thread:$0]  (!%p1825_p11), %s2256_s1, 256, %s242_s9, [#allocation6], %s1710_s20, %s1710_s20, %s1711_s8  }
  0x31   : > { %p44_p1 = scmp.ge.s32.totalorder %s42_s11, 2  ;;  %s51_s14 = sadd.s32 1, %s1695_s23 }
  0x32   : > { %p58_p2 = scmp.ne.s32.totalorder %s1695_s23, %s1691_s22  ;;  %p59_p4 = scmp.eq.s32.totalorder %s1707_s26, 0 }
  0x33   : > { %s2276_s11 = smov (%p44_p1, %s42_s11), 0  ;;  %p2258_p8 = scmp.eq.s32.totalorder %s1795_s27, 1 }
  0x34   : > { %p1852_p6 = por %p59_p4, %p58_p2  ;;  %s46_s10 = ssub.s32 %s1703_s25, %s2276_s11 }
  0x35   : > { %p1858_p10 = por %p2258_p8, %p58_p2  ;;  %p1403_p12 = scmp.lt.s32.totalorder %s1707_s26, 2 }
  0x36   : > { %p49_p11 = scmp.eq.s32.totalorder %s46_s10, 0  ;;  %s258_s9 = sand.u32 1, %s1695_s23  }
  0x37   : > { %s1325_s17 = sshll.u32 %s258_s9, 2  ;;  %s1326_s19 = sshll.u32 %s1703_s25, 6 }
  0x38   : > { %s1867_s18 = scalar_select %p49_p11, %s1695_s23, %s51_s14  }
  0x39   : > { %s1873_s12 = scalar_lea.hbm %s2238_s0, %s1326_s19  ;;  %s262_s13 = scalar_lea.vmem [#allocation2], %s1325_s17 }
  0x3a   : > { %s270_s28 = sshll.u32 %s262_s13, 4  ;;  %p1879_p13 = pnand %p1403_p12, %p1852_p6  ;;  %s1875_s28 = int_to_ptr.vmem [resolvable:$true] %s270_s28 }
  0x3b   : > { %s259_s14 = scalar_lea.sflag [#allocation3], %s258_s9  ;;  %s1499_s1 = scalar_lea.hbm %s1873_s12, 64 }
  0x3c   : > { %p1500_p0 = scmp.ne.s32.totalorder %s1873_s12, %s1499_s1  ;;  %p1501_p3 = pneg %p1879_p13 }
  0x3d   : > { %s1504_s20 = scalar_lea.hbm %s2238_s0, 128  ;;  %p1505_p9 = scmp.lt.u32.totalorder %s1873_s12, %s2238_s0 }
  0x3e   : > { %p1502_p5 = pnand %p1501_p3, %p1500_p0  ;;  %p1506_p1 = scmp.lt.u32.totalorder %s1504_s20, %s1499_s1 }
  0x3f   : > { %p1508_p4 = scmp.lt.u32.totalorder %s1499_s1, %s1873_s12 }
  0x40   : > { %p1503_p7 = pneg %p1502_p5  ;;  %p1507_p2 = por %p1506_p1, %p1505_p9 }
  0x42   : > { %p1509_p6 = por %p1508_p4, %p1507_p2 }
  0x44   : > { %p1510_p8 = pnand %p1509_p6, %p1503_p7 }
  0x46   : > { %1513 = shalt.err (!%p1510_p8)
}
  0x47   : > { %s1514_s9 = scalar_lea.vmem %s1875_s28, 64  ;;  %s1712_s13 = smov [#allocation2]  }
  0x48   : > { %p1515_p12 = scmp.ne.s32.totalorder %s1875_s28, %s1514_s9  ;;  %s1519_s17 = sshll.u32 %s1712_s13, 4  ;;  %s1520_s17 = int_to_ptr.vmem [resolvable:$false] %s1519_s17 }
  0x49   : > { %s1521_s19 = scalar_lea.vmem %s1520_s17, 128  ;;  %p1522_p5 = scmp.lt.s32.totalorder %s1875_s28, %s1520_s17 }
  0x4a   : > { %p1517_p11 = pnand %p1515_p12, %p1501_p3  ;;  %p1523_p9 = scmp.lt.s32.totalorder %s1521_s19, %s1514_s9 }
  0x4c   : > { %p1518_p0 = pneg %p1517_p11  ;;  %p1524_p1 = por %p1523_p9, %p1522_p5 }
  0x4e   : > { %p1525_p2 = pnand %p1524_p1, %p1518_p0 }
  0x50   : > { %1528 = shalt.err (!%p1525_p2)
}
  0x51   : > { %1388 = dma.hbm_to_vmem [thread:$0]  (!%p1879_p13), %s1873_s12, 64, %s1875_s28, %s259_s14  }
  0x52   : > { %p2261_p7 = scmp.ne.s32.totalorder %s2254_s7, 0 }
  0x53   : > { %s1911_s1 = sand.u32 (!%p2261_p7), 1, %s1691_s22   ;;  %p2262_p3 = scmp.ne.s32.totalorder (!%p2261_p7), %s2252_s29, 0 }
  0x54   : > { %279 = sbr.rel (%p2261_p7) target bundleno = 650 (0x28a), region = 32  ;;  %s1328_s20 = sshll.u32 (!%p2261_p7), %s1911_s1, 2 }
  0x55   : > { %s282_s15 = scalar_lea.sflag (!%p2261_p7), [#allocation3], %s1911_s1  ;;  %s285_s8 = scalar_lea.vmem (!%p2261_p7), [#allocation2], %s1328_s20 }
  0x5b   : > { %1666 = dma.done.wait (%p2262_p3), %s282_s15, 64  }
  0x5c   : > { %1668 = vsyncadd (%p2262_p3), %s282_s15, 4294967232  ;;  %p2263_p4 = scmp.eq.s32.totalorder %s1795_s27, 0 }
  0x5e   : > { %1670 = dma.done.wait (%p2263_p4), [#allocation6], 256   ;;  %p2264_p13 = pmov %p2263_p4 }
  0x5f   : > { %v1713_v0 = vmov 0.0   ;;  %vm1714_vm0 = vmmov 0   ;;  %v1469_v1 = vld [vmem:[#allocation5] sm:$0xff]   ;;  %v1470_v2 = vld [vmem:[#allocation5 + $0x8] sm:$0xff]   ;;  %v334_v3 = vld [vmem:[%s285_s8] sm:$0xf]  ;;  %v413_v13 = vlaneseq }
  0x60   : > { %1672 = vsyncadd (%p2264_p13), [#allocation6], 4294967040  ;;  %1359 = vmatprep.subr.bf16.mxu0 %v1713_v0  ;;  %1363 = vmatprep.mubr.msk.bf16.mxu0 %vm1714_vm0, %v1713_v0  ;;  %vm358_vm1 = vcmask 261120   ;;  %v1334_v4 = vld [vmem:[%s2240_s2] ss:$0 sm:$0xff]  ;;  %s1715_s7 = smov 104  }
  0x61   : > { %1360 = vmatpush3.bf16.msra.mxu0 %v1469_v1  ;;  %s1716_s12 = smov 120   ;;  %s1717_s10 = smov 96   ;;  %v1720_v11 = vmov 1983009808   ;;  %v1721_v14 = vmov 1934713408  }
  0x62   : > { %1361 = vmatprep.subr.bf16.mxu0 %v1713_v0  ;;  %s1718_s14 = smov 112   ;;  %s1719_s9 = smov 64   ;;  %v411_v12 = vunpack.c.l.s4 %v1720_v11  ;;  %v428_v15 = vunpack.c.l.s4 %v1721_v14  ;;  %v414_v17 = vshrl.u32 %v413_v13, 7  ;;  %v1722_v34 = vmov 0  }
  0x63   : > { %s1723_s13 = smov 48   ;;  %s1330_s17 = sshll.u32 %s1911_s1, 4  ;;  %vm575_vm2 = vcmask 60416  }
  0x64   : > { %v412_v16 = vunpack.c.0.s8 %v411_v12  ;;  %v429_v18 = vunpack.c.0.s8 %v428_v15  ;;  %s311_s19 = scalar_lea.vmem [#allocation7], %s1330_s17  ;;  %s2249_s20 = sshll.u32 %s1699_s24, 8 }
  0x65   : > { %1362 = vmatpush3.bf16.msra.mxu0 %v1470_v2  ;;  %s1965_s28 = scalar_lea.hbm %s2241_s3, %s2249_s20  ;;  %s1076_s29 = sshll.u32 %s311_s19, 4  ;;  %s1967_s29 = int_to_ptr.vmem [resolvable:$true] %s1076_s29 }
  0x66   : > { %v1927_v19 = vsub.s32 %v412_v16, %v414_v17  ;;  %v1930_v23 = vsub.s32 %v429_v18, %v414_v17 }
  0x68   : > { %1364 = vmatmul.mubr.msk.bf16.vlgmr.msra.gmra.mrb[0].mxu0 %vm358_vm1, %v334_v3 }
 0x13b   : > { %v396_v5 = vpop.f32.mrb[0].mxu0 }
 0x13c   : > { %v397_v6 = vadd.f32 %v1334_v4, %v396_v5  ;;  %v1365_v7 = vpop.f32.mrb[1].mxu0 }
 0x13d   : > { %v399_v8 = vpop.f32.mrb[2].mxu0 }
 0x13e   : > { %v402_v9 = vpack.c.bf16 %v397_v6, %v397_v6  ;;  %v1366_v10 = vpop.f32.mrb[3].mxu0 }
 0x140   : > { %408 = vrot.lane.b32.xlu1 %v402_v9, %s1715_s7  ;;  %404 = vrot.lane.b32.xlu0 %v402_v9, %s1716_s12  ;;  %v416_v30 = vrot.slane %v402_v9, %v1927_v19  ;;  %s1047_s7 = scalar_lea.sflag [#allocation4], %s1911_s1  ;;  %s1529_s12 = scalar_lea.vmem %s1967_s29, 256 }
 0x141   : > { %p1530_p6 = scmp.ne.s32.totalorder %s1967_s29, %s1529_s12 }
 0x143   : > { %p1531_p8 = pnand %p1530_p6, %p1858_p10 }
 0x144   : > { %580 = vrot.lane.b32.xlu1 %v402_v9, %s1717_s10  ;;  %406 = vrot.lane.b32.xlu0 %v402_v9, %s1718_s14 }
 0x145   : > { %p1532_p12 = pneg %p1531_p8 }
 0x148   : > { %758 = vrot.lane.b32.xlu1 %v402_v9, %s1719_s9 }
 0x1b2   : > { %v409_v20 = vpop.permute.xlu1 %408  ;;  %v405_v21 = vpop.permute.xlu0 %404 }
 0x1b3   : > { %v458_v22 = vrot.slane %v409_v20, %v1927_v19  ;;  %v450_v24 = vrot.slane %v405_v21, %v1927_v19  ;;  %582 = vrot.lane.b32.xlu0 %v405_v21, %s1717_s10 }
 0x1b5   : > { %v459_v25 = vcombine.low %v450_v24, %v458_v22  ;;  %v460_v26 = vcombine.high %v450_v24, %v458_v22 }
 0x1b6   : > { %v407_v27 = vpop.permute.xlu0 %406 }
 0x1b7   : > { %v467_v28 = vrot.slane %v459_v25, %v1930_v23  ;;  %v424_v29 = vrot.slane %v407_v27, %v1927_v19  ;;  %586 = vrot.lane.b32.xlu0 %v409_v20, %s1717_s10  ;;  %584 = vrot.lane.b32.xlu1 %v407_v27, %s1717_s10  ;;  %v474_v31 = vrot.slane %v460_v26, %v1930_v23  ;;  %s1724_s10 = smov [#allocation7]  }
 0x1b8   : > { %s1533_s14 = sshll.u32 %s1724_s10, 4  ;;  %s1534_s14 = int_to_ptr.vmem [resolvable:$false] %s1533_s14 }
 0x1b9   : > { %v425_v32 = vcombine.low %v416_v30, %v424_v29  ;;  %v426_v33 = vcombine.high %v416_v30, %v424_v29  ;;  %v475_v35 = vcombine.high %v467_v28, %v1722_v34  ;;  %v476_v38 = vcombine.high %v474_v31, %v1722_v34  ;;  %p1536_p11 = scmp.lt.s32.totalorder %s1967_s29, %s1534_s14 }
 0x1ba   : > { %v482_v39 = vshrl.u32 %v467_v28, 16  ;;  %v498_v45 = vshrl.u32 %v474_v31, 16 }
 0x1bb   : > { %760 = vrot.lane.b32.xlu0 %v405_v21, %s1719_s9  ;;  %v433_v36 = vrot.slane %v425_v32, %v1930_v23  ;;  %v440_v37 = vrot.slane %v426_v33, %v1930_v23  ;;  %902 = vrot.lane.b32.xlu1 %v402_v9, %s1723_s13  ;;  %v490_v44 = vshrl.u32 %v475_v35, 16  ;;  %v506_v52 = vshrl.u32 %v476_v38, 16 }
 0x1bd   : > { %v441_v40 = vcombine.high %v433_v36, %v1722_v34  ;;  %v442_v41 = vcombine.high %v440_v37, %v1722_v34  ;;  %v479_v42 = vpack.i.b16 %v467_v28, %v433_v36  ;;  %v481_v43 = vshrl.u32 %v433_v36, 16 }
 0x1be   : > { %v495_v46 = vpack.i.b16 %v474_v31, %v440_v37  ;;  %v497_v47 = vshrl.u32 %v440_v37, 16 }
 0x1bf   : > { %904 = vrot.lane.b32.xlu0 %v405_v21, %s1723_s13  ;;  %v483_v48 = vpack.i.b16 %v482_v39, %v481_v43  ;;  %v487_v49 = vpack.i.b16 %v475_v35, %v441_v40  ;;  %v489_v50 = vshrl.u32 %v441_v40, 16  ;;  %v503_v51 = vpack.i.b16 %v476_v38, %v442_v41  ;;  %s1535_s13 = scalar_lea.vmem %s1534_s14, 512 }
 0x1c0   : > { %v499_v53 = vpack.i.b16 %v498_v45, %v497_v47  ;;  %v505_v54 = vshrl.u32 %v442_v41, 16  ;;  %v509_v55 = vcombine.low %v479_v42, %v495_v46  ;;  %p1537_p0 = scmp.lt.s32.totalorder %s1535_s13, %s1529_s12 }
 0x1c1   : > { %v491_v56 = vpack.i.b16 %v490_v44, %v489_v50  ;;  %v517_v57 = vcombine.low %v487_v49, %v503_v51 }
 0x1c2   : > { %v507_v58 = vpack.i.b16 %v506_v52, %v505_v54  ;;  %v534_v59 = vcombine.low %v483_v48, %v499_v53  ;;  %v516_v60 = vrot.slane %v509_v55, %v1927_v19  ;;  %p1538_p5 = por %p1537_p0, %p1536_p11 }
 0x1c3   : > { %v524_v61 = vrot.slane %v517_v57, %v1927_v19 }
 0x1c4   : > { %v542_v62 = vcombine.low %v491_v56, %v507_v58  ;;  %v541_v0 = vrot.slane %v534_v59, %v1927_v19  ;;  %p1539_p9 = pnand %p1538_p5, %p1532_p12 }
 0x1c5   : > { %v525_v63 = vcombine.low %v516_v60, %v524_v61 }
 0x1c6   : > { %v549_v1 = vrot.slane %v542_v62, %v1927_v19 }
 0x1c7   : > { %v532_v2 = vrot.slane %v525_v63, %v1930_v23 }
 0x1c8   : > { %v550_v3 = vcombine.low %v541_v0, %v549_v1 }
 0x1c9   : > { %v533_v4 = vcombine.high %v532_v2, %v1722_v34  ;;  %v563_v8 = vshrl.u32 %v532_v2, 16 }
 0x1ca   : > { %v557_v5 = vrot.slane %v550_v3, %v1930_v23 }
 0x1cb   : > { %v571_v12 = vshrl.u32 %v533_v4, 16 }
 0x1cc   : > { %v558_v6 = vcombine.high %v557_v5, %v1722_v34  ;;  %v561_v7 = vpack.i.b16 %v557_v5, %v532_v2  ;;  %v564_v9 = vshrl.u32 %v557_v5, 16 }
 0x1ce   : > { %v565_v10 = vpack.i.b16 %v564_v9, %v563_v8  ;;  %v569_v11 = vpack.i.b16 %v558_v6, %v533_v4  ;;  %v572_v13 = vshrl.u32 %v558_v6, 16  ;;  %576 = vst.msk [vmem:[%s311_s19] sm:$0xf] %vm575_vm2, %v561_v7 }
 0x1d0   : > { %v573_v14 = vpack.i.b16 %v572_v13, %v571_v12  ;;  %577 = vst.msk [vmem:[%s311_s19 + $0x4] sm:$0xf] %vm575_vm2, %v565_v10  ;;  %578 = vst.msk [vmem:[%s311_s19 + $0x8] sm:$0xf] %vm575_vm2, %v569_v11 }
 0x1d2   : > { %579 = vst.msk [vmem:[%s311_s19 + $0xc] sm:$0xf] %vm575_vm2, %v573_v14 }
 0x1d3   : > { %1542 = shalt.err (!%p1539_p9)
}
 0x1d4   : > { %s1543_s19 = scalar_lea.hbm %s1965_s28, 256  ;;  %s1547_s10 = scalar_lea.hbm %s2241_s3, 512 }
 0x1d5   : > { %p1544_p1 = scmp.ne.s32.totalorder %s1965_s28, %s1543_s19  ;;  %p1548_p3 = scmp.lt.u32.totalorder %s1965_s28, %s2241_s3 }
 0x1d6   : > { %p1549_p4 = scmp.lt.u32.totalorder %s1547_s10, %s1543_s19  ;;  %p1551_p6 = scmp.lt.u32.totalorder %s1543_s19, %s1965_s28 }
 0x1d7   : > { %p1545_p2 = pnand %p1544_p1, %p1858_p10 }
 0x1d8   : > { %p1550_p13 = por %p1549_p4, %p1548_p3 }
 0x1d9   : > { %p1546_p7 = pneg %p1545_p2 }
 0x1da   : > { %p1552_p8 = por %p1551_p6, %p1550_p13 }
 0x1dc   : > { %p1553_p12 = pnand %p1552_p8, %p1546_p7 }
 0x1de   : > { %1556 = shalt.err (!%p1553_p12)
}
 0x1df   : > { %s1725_s12 = smov 4   ;;  %v581_v15 = vpop.permute.xlu1 %580  ;;  %s1051_s20 = sand.u32 1, %s1795_s27  }
 0x1e0   : > { %1373 = dma.vmem_to_hbm [thread:$0]  (%p1858_p10), %s1967_s29, 256, %s1965_s28, %s1047_s7, %s1719_s9, %s1719_s9, %s1725_s12   ;;  %v595_v27 = vrot.slane %v581_v15, %v1927_v19 }
 0x1e1   : > { %s318_s28 = scalar_lea.vmem [#allocation8], %s1330_s17  ;;  %s2265_s17 = sshll.u32 %s1699_s24, 8 }
 0x1e2   : > { %s1093_s29 = sshll.u32 %s318_s28, 4  ;;  %s2074_s19 = scalar_lea.hbm %s2242_s4, %s2265_s17  ;;  %s2076_s29 = int_to_ptr.vmem [resolvable:$true] %s1093_s29 }
 0x1e3   : > { %v759_v16 = vpop.permute.xlu1 %758  ;;  %s1332_s15 = sshll.u32 %s1911_s1, 3  ;;  %s2092_s8 = scalar_lea.sflag [#allocation9], %s1051_s20 }
 0x1e4   : > { %v769_v17 = vrot.slane %v759_v16, %v1927_v19  ;;  %s1557_s10 = scalar_lea.vmem %s2076_s29, 256  ;;  %s1726_s14 = smov [#allocation8]  }
 0x1e5   : > { %p1558_p11 = scmp.ne.s32.totalorder %s2076_s29, %s1557_s10  ;;  %s1561_s17 = sshll.u32 %s1726_s14, 4  ;;  %s1562_s17 = int_to_ptr.vmem [resolvable:$false] %s1561_s17 }
 0x1e6   : > { %v770_v20 = vcombine.high %v769_v17, %v1722_v34  ;;  %v1999_v22 = vrot.slane %v769_v17, %v1930_v23  ;;  %p1564_p9 = scmp.lt.s32.totalorder %s2076_s29, %s1562_s17 }
 0x1e7   : > { %p1559_p0 = pnand %p1558_p11, %p1858_p10 }
 0x1e8   : > { %v2005_v28 = vrot.slane %v770_v20, %v1930_v23  ;;  %v2010_v36 = vcombine.high %v1999_v22, %v1722_v34  ;;  %v816_v3 = vshrl.u32 %v1999_v22, 16 }
 0x1e9   : > { %p1560_p5 = pneg %p1559_p0 }
 0x1ea   : > { %v2016_v39 = vcombine.high %v2005_v28, %v1722_v34  ;;  %v824_v6 = vshrl.u32 %v2010_v36, 16  ;;  %v832_v7 = vshrl.u32 %v2005_v28, 16 }
 0x1ec   : > { %v840_v10 = vshrl.u32 %v2016_v39, 16 }
 0x225   : > { %v583_v18 = vpop.permute.xlu0 %582 }
 0x226   : > { %v629_v24 = vrot.slane %v583_v18, %v1927_v19 }
 0x229   : > { %v587_v21 = vpop.permute.xlu0 %586  ;;  %v585_v25 = vpop.permute.xlu1 %584 }
 0x22a   : > { %v637_v26 = vrot.slane %v587_v21, %v1927_v19  ;;  %v603_v29 = vrot.slane %v585_v25, %v1927_v19 }
 0x22c   : > { %v638_v30 = vcombine.low %v629_v24, %v637_v26  ;;  %v639_v31 = vcombine.high %v629_v24, %v637_v26  ;;  %v604_v32 = vcombine.low %v595_v27, %v603_v29  ;;  %v605_v33 = vcombine.high %v595_v27, %v603_v29 }
 0x22d   : > { %v761_v35 = vpop.permute.xlu0 %760  ;;  %v903_v51 = vpop.permute.xlu1 %902 }
 0x22e   : > { %v646_v37 = vrot.slane %v638_v30, %v1930_v23  ;;  %v653_v38 = vrot.slane %v639_v31, %v1930_v23  ;;  %v612_v40 = vrot.slane %v604_v32, %v1930_v23  ;;  %v619_v41 = vrot.slane %v605_v33, %v1930_v23 }
 0x22f   : > { %v794_v42 = vrot.slane %v761_v35, %v1927_v19  ;;  %v913_v63 = vrot.slane %v903_v51, %v1927_v19 }
 0x230   : > { %v654_v43 = vcombine.high %v646_v37, %v1722_v34  ;;  %v655_v44 = vcombine.high %v653_v38, %v1722_v34  ;;  %v661_v45 = vshrl.u32 %v646_v37, 16  ;;  %v677_v46 = vshrl.u32 %v653_v38, 16 }
 0x231   : > { %v620_v47 = vcombine.high %v612_v40, %v1722_v34  ;;  %v621_v48 = vcombine.high %v619_v41, %v1722_v34  ;;  %v660_v49 = vshrl.u32 %v612_v40, 16  ;;  %v676_v50 = vshrl.u32 %v619_v41, 16 }
 0x232   : > { %v658_v52 = vpack.i.b16 %v646_v37, %v612_v40  ;;  %v669_v53 = vshrl.u32 %v654_v43, 16  ;;  %v674_v54 = vpack.i.b16 %v653_v38, %v619_v41  ;;  %v685_v55 = vshrl.u32 %v655_v44, 16 }
 0x233   : > { %v668_v56 = vshrl.u32 %v620_v47, 16  ;;  %v684_v57 = vshrl.u32 %v621_v48, 16  ;;  %v662_v58 = vpack.i.b16 %v661_v45, %v660_v49  ;;  %v666_v59 = vpack.i.b16 %v654_v43, %v620_v47  ;;  %v905_v47 = vpop.permute.xlu0 %904 }
 0x234   : > { %v678_v60 = vpack.i.b16 %v677_v46, %v676_v50  ;;  %v682_v61 = vpack.i.b16 %v655_v44, %v621_v48  ;;  %v688_v62 = vcombine.low %v658_v52, %v674_v54  ;;  %v795_v2 = vcombine.high %v794_v42, %v1722_v34 }
 0x235   : > { %v670_v0 = vpack.i.b16 %v669_v53, %v668_v56  ;;  %v686_v1 = vpack.i.b16 %v685_v55, %v684_v57  ;;  %v802_v9 = vrot.slane %v794_v42, %v1930_v23  ;;  %v914_v13 = vcombine.high %v913_v63, %v1722_v34 }
 0x236   : > { %v696_v4 = vcombine.low %v666_v59, %v682_v61  ;;  %v713_v5 = vcombine.low %v662_v58, %v678_v60  ;;  %v695_v11 = vrot.slane %v688_v62, %v1927_v19  ;;  %v809_v16 = vrot.slane %v795_v2, %v1930_v23 }
 0x237   : > { %v721_v8 = vcombine.low %v670_v0, %v686_v1  ;;  %v810_v17 = vcombine.high %v802_v9, %v1722_v34  ;;  %v2040_v20 = vrot.slane %v913_v63, %v1930_v23  ;;  %v814_v21 = vpack.i.b16 %v802_v9, %v1999_v22 }
 0x238   : > { %v703_v12 = vrot.slane %v696_v4, %v1927_v19  ;;  %v720_v14 = vrot.slane %v713_v5, %v1927_v19  ;;  %v817_v24 = vshrl.u32 %v802_v9, 16  ;;  %v811_v26 = vcombine.high %v809_v16, %v1722_v34 }
 0x239   : > { %v728_v15 = vrot.slane %v721_v8, %v1927_v19  ;;  %v822_v27 = vpack.i.b16 %v810_v17, %v2010_v36  ;;  %v825_v29 = vshrl.u32 %v810_v17, 16  ;;  %v830_v32 = vpack.i.b16 %v809_v16, %v2005_v28 }
 0x23a   : > { %v704_v18 = vcombine.low %v695_v11, %v703_v12  ;;  %v818_v31 = vpack.i.b16 %v817_v24, %v816_v3  ;;  %v833_v33 = vshrl.u32 %v809_v16, 16  ;;  %v838_v38 = vpack.i.b16 %v811_v26, %v2016_v39 }
 0x23b   : > { %v729_v25 = vcombine.low %v720_v14, %v728_v15  ;;  %v826_v37 = vpack.i.b16 %v825_v29, %v824_v6  ;;  %v841_v22 = vshrl.u32 %v811_v26, 16  ;;  %v844_v36 = vcombine.low %v814_v21, %v830_v32 }
 0x23c   : > { %v711_v30 = vrot.slane %v704_v18, %v1930_v23  ;;  %v834_v42 = vpack.i.b16 %v833_v33, %v832_v7  ;;  %v2053_v48 = vrot.slane %v914_v13, %v1930_v23  ;;  %v852_v49 = vcombine.low %v822_v27, %v838_v38 }
 0x23d   : > { %v736_v35 = vrot.slane %v729_v25, %v1930_v23  ;;  %v842_v46 = vpack.i.b16 %v841_v22, %v840_v10  ;;  %v851_v54 = vrot.slane %v844_v36, %v1927_v19  ;;  %v938_v56 = vrot.slane %v905_v47, %v1927_v19 }
 0x23e   : > { %v712_v40 = vcombine.high %v711_v30, %v1722_v34  ;;  %v742_v41 = vshrl.u32 %v711_v30, 16  ;;  %v868_v39 = vcombine.low %v818_v31, %v834_v42  ;;  %v859_v55 = vrot.slane %v852_v49, %v1927_v19 }
 0x23f   : > { %v737_v43 = vcombine.high %v736_v35, %v1722_v34  ;;  %v740_v44 = vpack.i.b16 %v736_v35, %v711_v30  ;;  %v743_v45 = vshrl.u32 %v736_v35, 16  ;;  %v876_v53 = vcombine.low %v826_v37, %v842_v46 }
 0x240   : > { %v750_v28 = vshrl.u32 %v712_v40, 16  ;;  %v2063_v58 = vcombine.high %v2040_v20, %v1722_v34  ;;  %v875_v59 = vrot.slane %v868_v39, %v1927_v19  ;;  %v2080_v61 = vcombine.high %v2053_v48, %v1722_v34 }
 0x241   : > { %v744_v50 = vpack.i.b16 %v743_v45, %v742_v41  ;;  %v748_v51 = vpack.i.b16 %v737_v43, %v712_v40  ;;  %v751_v52 = vshrl.u32 %v737_v43, 16  ;;  %754 = vst.msk [vmem:[%s318_s28] sm:$0xf] %vm575_vm2, %v740_v44  ;;  %v883_v60 = vrot.slane %v876_v53, %v1927_v19 }
 0x242   : > { %v860_v62 = vcombine.low %v851_v54, %v859_v55  ;;  %v939_v63 = vcombine.high %v938_v56, %v1722_v34  ;;  %v946_v0 = vrot.slane %v938_v56, %v1930_v23  ;;  %v960_v2 = vshrl.u32 %v2040_v20, 16 }
 0x243   : > { %v752_v57 = vpack.i.b16 %v751_v52, %v750_v28  ;;  %755 = vst.msk [vmem:[%s318_s28 + $0x4] sm:$0xf] %vm575_vm2, %v744_v50  ;;  %756 = vst.msk [vmem:[%s318_s28 + $0x8] sm:$0xf] %vm575_vm2, %v748_v51  ;;  %v884_v1 = vcombine.low %v875_v59, %v883_v60 }
 0x244   : > { %v867_v3 = vrot.slane %v860_v62, %v1930_v23  ;;  %v953_v4 = vrot.slane %v939_v63, %v1930_v23  ;;  %v954_v5 = vcombine.high %v946_v0, %v1722_v34 }
 0x245   : > { %757 = vst.msk [vmem:[%s318_s28 + $0xc] sm:$0xf] %vm575_vm2, %v752_v57  ;;  %s1563_s28 = scalar_lea.vmem %s1562_s17, 512 }
 0x246   : > { %p1565_p1 = scmp.lt.s32.totalorder %s1563_s28, %s1557_s10 }
 0x248   : > { %p1566_p2 = por %p1565_p1, %p1564_p9 }
 0x24a   : > { %p1567_p7 = pnand %p1566_p2, %p1560_p5 }
 0x24c   : > { %1570 = shalt.err (!%p1567_p7)
}
 0x24d   : > { %s1571_s27 = scalar_lea.hbm %s2074_s19, 256  ;;  %s1575_s13 = scalar_lea.hbm %s2242_s4, 512 }
 0x24e   : > { %p1572_p3 = scmp.ne.s32.totalorder %s2074_s19, %s1571_s27  ;;  %p1576_p6 = scmp.lt.u32.totalorder %s2074_s19, %s2242_s4 }
 0x24f   : > { %p1577_p8 = scmp.lt.u32.totalorder %s1575_s13, %s1571_s27  ;;  %p1579_p11 = scmp.lt.u32.totalorder %s1571_s27, %s2074_s19 }
 0x250   : > { %p1573_p4 = pnand %p1572_p3, %p1858_p10 }
 0x251   : > { %p1578_p12 = por %p1577_p8, %p1576_p6 }
 0x252   : > { %p1574_p13 = pneg %p1573_p4 }
 0x253   : > { %p1580_p0 = por %p1579_p11, %p1578_p12 }
 0x255   : > { %p1581_p5 = pnand %p1580_p0, %p1574_p13 }
 0x257   : > { %1584 = shalt.err (!%p1581_p5)
}
 0x258   : > { %1374 = dma.vmem_to_hbm [thread:$0]  (%p1858_p10), %s2076_s29, 256, %s2074_s19, %s2092_s8, %s1719_s9, %s1719_s9, %s1725_s12   ;;  %v968_v6 = vshrl.u32 %v2063_v58, 16  ;;  %v976_v7 = vshrl.u32 %v2053_v48, 16  ;;  %v891_v8 = vrot.slane %v884_v1, %v1930_v23  ;;  %v961_v9 = vshrl.u32 %v946_v0, 16 }
 0x259   : > { %v984_v10 = vshrl.u32 %v2080_v61, 16  ;;  %v955_v11 = vcombine.high %v953_v4, %v1722_v34  ;;  %v958_v12 = vpack.i.b16 %v946_v0, %v2040_v20  ;;  %v969_v13 = vshrl.u32 %v954_v5, 16  ;;  %s2250_s10 = sshll.u32 %s1699_s24, 7  ;;  %s325_s28 = scalar_lea.vmem [#allocation10], %s1332_s15 }
 0x25a   : > { %s1110_s27 = sshll.u32 %s325_s28, 4  ;;  %v894_v14 = vpack.i.b16 %v891_v8, %v867_v3  ;;  %v896_v15 = vshrl.u32 %v867_v3, 16  ;;  %v897_v16 = vshrl.u32 %v891_v8, 16  ;;  %v974_v17 = vpack.i.b16 %v953_v4, %v2053_v48  ;;  %s2137_s20 = scalar_lea.hbm %s2243_s5, %s2250_s10  ;;  %s2139_s27 = int_to_ptr.vmem [resolvable:$true] %s1110_s27 }
 0x25b   : > { %v966_v18 = vpack.i.b16 %v954_v5, %v2063_v58  ;;  %v977_v21 = vshrl.u32 %v953_v4, 16  ;;  %v982_v24 = vpack.i.b16 %v955_v11, %v2080_v61  ;;  %v985_v25 = vshrl.u32 %v955_v11, 16  ;;  %s1585_s7 = scalar_lea.vmem %s2139_s27, 128  ;;  %s1727_s13 = smov [#allocation10]  }
 0x25c   : > { %v898_v34 = vpack.i.b16 %v897_v16, %v896_v15  ;;  %v962_v26 = vpack.i.b16 %v961_v9, %v960_v2  ;;  %v988_v20 = vcombine.low %v958_v12, %v974_v17  ;;  %900 = vst.msk [vmem:[%s325_s28] sm:$0xf] %vm575_vm2, %v894_v14  ;;  %v970_v27 = vpack.i.b16 %v969_v13, %v968_v6  ;;  %p1586_p9 = scmp.ne.s32.totalorder %s2139_s27, %s1585_s7  ;;  %s1589_s14 = sshll.u32 %s1727_s13, 4  ;;  %s1590_s14 = int_to_ptr.vmem [resolvable:$false] %s1589_s14 }
 0x25d   : > { %v978_v29 = vpack.i.b16 %v977_v21, %v976_v7  ;;  %v986_v30 = vpack.i.b16 %v985_v25, %v984_v10  ;;  %v996_v31 = vcombine.low %v966_v18, %v982_v24  ;;  %s1591_s17 = scalar_lea.vmem %s1590_s14, 256  ;;  %p1592_p7 = scmp.lt.s32.totalorder %s2139_s27, %s1590_s14 }
 0x25e   : > { %901 = vst.msk [vmem:[%s325_s28 + $0x4] sm:$0xf] %vm575_vm2, %v898_v34  ;;  %v995_v32 = vrot.slane %v988_v20, %v1927_v19  ;;  %p1587_p1 = pnand %p1586_p9, %p1858_p10  ;;  %p1593_p3 = scmp.lt.s32.totalorder %s1591_s17, %s1585_s7 }
 0x25f   : > { %v1003_v33 = vrot.slane %v996_v31, %v1927_v19  ;;  %v1012_v35 = vcombine.low %v962_v26, %v978_v29  ;;  %v1020_v37 = vcombine.low %v970_v27, %v986_v30 }
 0x260   : > { %p1588_p2 = pneg %p1587_p1  ;;  %p1594_p4 = por %p1593_p3, %p1592_p7 }
 0x262   : > { %p1595_p13 = pnand %p1594_p4, %p1588_p2 }
 0x264   : > { %1598 = shalt.err (!%p1595_p13)
}
 0x265   : > { %s1599_s28 = scalar_lea.hbm %s2137_s20, 128  ;;  %s1603_s13 = scalar_lea.hbm %s2243_s5, 256 }
 0x266   : > { %p1600_p6 = scmp.ne.s32.totalorder %s2137_s20, %s1599_s28  ;;  %p1604_p11 = scmp.lt.u32.totalorder %s2137_s20, %s2243_s5 }
 0x267   : > { %p1605_p0 = scmp.lt.u32.totalorder %s1603_s13, %s1599_s28  ;;  %p1607_p9 = scmp.lt.u32.totalorder %s1599_s28, %s2137_s20 }
 0x268   : > { %p1601_p8 = pnand %p1600_p6, %p1858_p10 }
 0x269   : > { %p1606_p5 = por %p1605_p0, %p1604_p11 }
 0x26a   : > { %p1602_p12 = pneg %p1601_p8 }
 0x26b   : > { %p1608_p1 = por %p1607_p9, %p1606_p5 }
 0x26d   : > { %p1609_p2 = pnand %p1608_p1, %p1602_p12 }
 0x26f   : > { %1612 = shalt.err (!%p1609_p2)
}
 0x270   : > { %1375 = dma.vmem_to_hbm [thread:$0]  (%p1858_p10), %s2139_s27, 128, %s2137_s20, %s2092_s8, %s1719_s9, %s1719_s9, %s1725_s12   ;;  %v1004_v38 = vcombine.low %v995_v32, %v1003_v33  ;;  %v1019_v22 = vrot.slane %v1012_v35, %v1927_v19  ;;  %v1027_v40 = vrot.slane %v1020_v37, %v1927_v19 }
 0x271   : > { %s332_s10 = scalar_lea.vmem [#allocation11], %s1332_s15  ;;  %s2266_s8 = sshll.u32 %s1699_s24, 7 }
 0x272   : > { %v1011_v41 = vrot.slane %v1004_v38, %v1930_v23  ;;  %v1028_v42 = vcombine.low %v1019_v22, %v1027_v40  ;;  %s1127_s7 = sshll.u32 %s332_s10, 4  ;;  %s2181_s17 = scalar_lea.hbm %s2244_s6, %s2266_s8  ;;  %s2183_s7 = int_to_ptr.vmem [resolvable:$true] %s1127_s7 }
 0x273   : > { %s1062_s15 = scalar_lea.sflag [#allocation12], %s1911_s1  ;;  %s1613_s28 = scalar_lea.vmem %s2183_s7, 128 }
 0x274   : > { %v1035_v36 = vrot.slane %v1028_v42, %v1930_v23  ;;  %v1040_v44 = vshrl.u32 %v1011_v41, 16  ;;  %p1614_p7 = scmp.ne.s32.totalorder %s2183_s7, %s1613_s28  ;;  %s1728_s29 = smov [#allocation11]  }
 0x275   : > { %s1617_s24 = sshll.u32 %s1728_s29, 4  ;;  %s1618_s24 = int_to_ptr.vmem [resolvable:$false] %s1617_s24 }
 0x276   : > { %v1038_v43 = vpack.i.b16 %v1035_v36, %v1011_v41  ;;  %v1041_v45 = vshrl.u32 %v1035_v36, 16  ;;  %p1615_p3 = pnand %p1614_p7, %p1858_p10  ;;  %s1619_s19 = scalar_lea.vmem %s1618_s24, 256 }
 0x277   : > { %p1620_p13 = scmp.lt.s32.totalorder %s2183_s7, %s1618_s24  ;;  %p1621_p6 = scmp.lt.s32.totalorder %s1619_s19, %s1613_s28 }
 0x278   : > { %v1042_v46 = vpack.i.b16 %v1041_v45, %v1040_v44  ;;  %1044 = vst.msk [vmem:[%s332_s10] sm:$0xf] %vm575_vm2, %v1038_v43  ;;  %p1616_p4 = pneg %p1615_p3 }
 0x279   : > { %p1622_p8 = por %p1621_p6, %p1620_p13 }
 0x27a   : > { %1045 = vst.msk [vmem:[%s332_s10 + $0x4] sm:$0xf] %vm575_vm2, %v1042_v46 }
 0x27b   : > { %p1623_p12 = pnand %p1622_p8, %p1616_p4 }
 0x27d   : > { %1626 = shalt.err (!%p1623_p12)
}
 0x27e   : > { %s1627_s13 = scalar_lea.hbm %s2181_s17, 128  ;;  %s1631_s8 = scalar_lea.hbm %s2244_s6, 256 }
 0x27f   : > { %p1628_p11 = scmp.ne.s32.totalorder %s2181_s17, %s1627_s13  ;;  %p1632_p9 = scmp.lt.u32.totalorder %s2181_s17, %s2244_s6 }
 0x280   : > { %p1633_p1 = scmp.lt.u32.totalorder %s1631_s8, %s1627_s13  ;;  %p1635_p7 = scmp.lt.u32.totalorder %s1627_s13, %s2181_s17 }
 0x281   : > { %p1629_p0 = pnand %p1628_p11, %p1858_p10 }
 0x282   : > { %p1634_p2 = por %p1633_p1, %p1632_p9 }
 0x283   : > { %p1630_p5 = pneg %p1629_p0 }
 0x284   : > { %p1636_p3 = por %p1635_p7, %p1634_p2 }
 0x286   : > { %p1637_p4 = pnand %p1636_p3, %p1630_p5 }
 0x288   : > { %1640 = shalt.err (!%p1637_p4)
}
 0x289   : > { %1376 = dma.vmem_to_hbm [thread:$0]  (%p1858_p10), %s2183_s7, 128, %s2181_s17, %s1062_s15, %s1719_s9, %s1719_s9, %s1725_s12  }
 0x28a PF: > { %s1142_s28 = sand.u32 1, %s1687_s21   ;;  %p2267_p13 = scmp.ne.s32.totalorder %s2253_s30, 0 }
 0x28b   : > { %p2268_p6 = scmp.ge.s32.totalorder %s1707_s26, 2  ;;  %s1143_s29 = scalar_lea.sflag [#allocation4], %s1142_s28 }
 0x28d   : > { %p1390_p8 = pnand %p2268_p6, %p2267_p13 }
 0x28f   : > { %1674 = dma.done.wait (!%p1390_p8), %s1143_s29, 256  }
 0x290   : > { %1676 = vsyncadd (!%p1390_p8), %s1143_s29, 4294967040  ;;  %s2269_s16 = sadd.s32 4294967294, %s1707_s26  }
 0x291   : > { %s1151_s24 = sand.u32 1, %s2269_s16  }
 0x292   : > { %s1152_s19 = scalar_lea.sflag [#allocation9], %s1151_s24 }
 0x293   : > { %1678 = dma.done.wait (!%p1390_p8), %s1152_s19, 384  }
 0x294   : > { %1680 = vsyncadd (!%p1390_p8), %s1152_s19, 4294966912  ;;  %s1170_s1 = scalar_lea.sflag [#allocation12], %s1142_s28 }
 0x295   : > { %1682 = dma.done.wait (!%p1390_p8), %s1170_s1, 128  }
 0x296   : > { %1684 = vsyncadd (!%p1390_p8), %s1170_s1, 4294967168  ;;  %s30_s26 = sadd.s32 1, %s1707_s26   ;;  %s2270_s21 = smov %s1691_s22 }
 0x297   : > { %p27_p10 = scmp.ge.s32.totalorder %s30_s26, 4   ;;  %s2271_s22 = smov %s1695_s23 }
 0x298   : > { %s2272_s23 = smov %s1867_s18  ;;  %s2273_s24 = smov %s1703_s25 }
 0x299   : > { %s2274_s25 = smov %s2276_s11  ;;  %29 = sbr.rel (!%p27_p10) target bundleno = 13 (0xd), region = 130 }
 0x2a0   :  { %1175 = vsyncpa [#allocation3], 1 }
 0x2a1   :  { %1177 = vsyncpa [#allocation3 + $0x1], 1 }
 0x2a2   :  { %1178 = vsyncpa [#allocation6], 1 }
 0x2a3   :  { %1179 = vsyncpa [#allocation4], 1 }
 0x2a4   :  { %1181 = vsyncpa [#allocation4 + $0x1], 1 }
 0x2a5   :  { %1182 = vsyncpa [#allocation9], 1 }
 0x2a6   :  { %1184 = vsyncpa [#allocation9 + $0x1], 1 }
 0x2a7   :  { %1185 = vsyncpa [#allocation12], 1 }
 0x2a8   :  { %1187 = vsyncpa [#allocation12 + $0x1], 1 }

</bundles_post_ra>
